<compile_context>
chip_gen: v7x
topology: tpu7x:2x2x1
jax: 0.10.0
libtpu: 0.0.40
codegen_flags: <defaults>
</compile_context>

<pallas_src>
import jax
import jax.numpy as jnp
from jax.experimental import pallas as pl
from jax.experimental.pallas import tpu as pltpu


def _round_up(x: int, m: int) -> int:
    return ((x + m - 1) // m) * m


def _critic_kernel(x_ref, w1_ref, b1_ref, w2_ref, b2_ref, o_ref):
    """One batch tile: packed Linear -> ReLU -> Linear (+ scalar bias), all f32."""
    # Layer 1 on the MXU: (TBp, P*S) @ (P*S, P*H), f32 accumulation.
    h = jnp.dot(x_ref[...], w1_ref[...], preferred_element_type=jnp.float32)
    h = jnp.maximum(h + b1_ref[...], 0.0)                 # bias + ReLU on the VPU
    # Layer 2 on the MXU: block-diagonal (P*H, P) fold of w2 + per-row reduction.
    v = jnp.dot(h, w2_ref[...], preferred_element_type=jnp.float32) + b2_ref[0]
    o_ref[...] = v.astype(o_ref.dtype)                    # narrow (TBp, P) store


def _pick_batch_tile(bp: int, block_b: int, row_bytes: int, vmem_budget: int) -> int:
    """Largest 128-multiple divisor of `bp` that fits block_b and the VMEM budget.

    Prefers tiles that leave an even grid length so ("parallel",) semantics can
    hand work to both v7x TensorCores.
    """
    cands = []
    t = 128
    lim = min(block_b, bp)
    while t <= lim:
        if bp % t == 0 and t * row_bytes <= vmem_budget:
            cands.append(t)
        t += 128
    if not cands:
        return 128
    even = [t for t in cands if (bp // t) % 2 == 0]
    return max(even) if even else max(cands)


def jit_fast_critic_forward(state, w1, b1, w2, b2, *, block_b: int = 8192,
                            vmem_budget_bytes: int = 24 * 1024 * 1024):
    """JITFastCritic.forward.

    state: (B, S) f32;  w1: (S, H);  b1: (H,);  w2: (H, 1);  b2: (1,).
    Returns (B,) f32 == (relu(state @ w1 + b1) @ w2 + b2).squeeze(-1).
    """
    B, S = state.shape
    H = w1.shape[1]

    # Pack P batch rows per 128-lane row when S allows it (lane-dense x tiles,
    # K=128 on the MXU).  Otherwise P=1 degenerates to the plain (TB, S) layout.
    P = 128 // S if (S <= 128 and 128 % S == 0 and S % 8 == 0) else 1

    # Pad the batch to a multiple of 128 only when ragged (<=127 rows; padded
    # rows just compute relu(b1) @ w2 + b2 and are sliced off below).
    Bp = _round_up(B, 128)
    if Bp != B:
        state = jnp.pad(state, ((0, Bp - B), (0, 0)))

    # Free, contiguous reshape: (Bp, S) -> (Bp/P, P*S).  No HBM copy.
    Rp = Bp // P
    x_packed = state.astype(jnp.float32).reshape(Rp, P * S)

    # Pre-packed parameters (tiny, built once, VMEM-resident across grid steps).
    eye = jnp.eye(P, dtype=jnp.float32)
    w1f = w1.astype(jnp.float32)
    w2f = w2.reshape(H, 1).astype(jnp.float32)
    # Block-diagonal (P*S, P*H): block (p, p) == w1.
    w1p = (eye[:, None, :, None] * w1f[None, :, None, :]).reshape(P * S, P * H)
    # Tiled bias row (1, P*H).
    b1p = jnp.tile(b1.reshape(1, H).astype(jnp.float32), (1, P))
    # Block-diagonal (P*H, P): block (p, p) == w2 column (folds w2-mul + reduce).
    w2p = (eye[:, None, :] * w2f.reshape(1, H, 1)).reshape(P * H, P)
    b2s = b2.reshape(1).astype(jnp.float32)               # scalar bias -> SMEM

    # Batch tile: conservative per-row VMEM estimate (double-buffered x tile,
    # a few live f32 hidden copies, narrow output) keeps us under the scoped
    # VMEM limit on every generation (v7x has only 64 MiB physical / 32 scoped).
    row_bytes = 2 * S * 4 + 4 * H * 4 + 2 * 4
    TB = _pick_batch_tile(Bp, block_b, row_bytes, vmem_budget_bytes)
    TBp = TB // P
    grid = (Bp // TB,)

    cost = pl.CostEstimate(
        flops=2 * Bp * S * H + 2 * Bp * H,
        transcendentals=0,
        bytes_accessed=Bp * S * 4 + Bp * 4 + (S * H + 2 * H + 1) * 4,
    )

    out = pl.pallas_call(
        _critic_kernel,
        out_shape=jax.ShapeDtypeStruct((Rp, P), jnp.float32),
        grid_spec=pl.GridSpec(
            grid=grid,
            in_specs=[
                pl.BlockSpec((TBp, P * S), lambda i: (i, 0)),    # lane-dense batch tile
                pl.BlockSpec((P * S, P * H), lambda i: (0, 0)),  # resident packed w1
                pl.BlockSpec((1, P * H), lambda i: (0, 0)),      # resident packed b1
                pl.BlockSpec((P * H, P), lambda i: (0, 0)),      # resident packed w2
                pl.BlockSpec(memory_space=pltpu.MemorySpace.SMEM),  # scalar b2
            ],
            out_specs=pl.BlockSpec((TBp, P), lambda i: (i, 0)),
        ),
        compiler_params=pltpu.CompilerParams(
            dimension_semantics=("parallel",),
            vmem_limit_bytes=32 * 1024 * 1024,
        ),
        cost_estimate=cost,
    )(x_packed, w1p, b1p, w2p, b2s)

    # (Rp, P) row-major is exactly the original batch order: free reshape,
    # drop the batch padding, and this is torch's .squeeze(-1).
    return out.reshape(Bp)[:B]


def init_params(key, state_dim, hidden_dim=64):
    """Deterministic Xavier-uniform weights, zero biases (mirrors the torch init)."""
    k1, k2 = jax.random.split(key)

    def xavier(k, fan_in, fan_out, shape):
        bound = jnp.sqrt(6.0 / (fan_in + fan_out))
        return jax.random.uniform(k, shape, jnp.float32, minval=-bound, maxval=bound)

    # Stored as (in, out) so the kernel computes x @ W.
    w1 = xavier(k1, state_dim, hidden_dim, (state_dim, hidden_dim))
    b1 = jnp.zeros((hidden_dim,), jnp.float32)
    w2 = xavier(k2, hidden_dim, 1, (hidden_dim, 1))
    b2 = jnp.zeros((1,), jnp.float32)
    return w1, b1, w2, b2


if __name__ == "__main__":
    key = jax.random.PRNGKey(0)
    k_params, k_state = jax.random.split(key)

    batch = 200          # ragged: exercises the <=127-row pad and a 2-step grid
    state_dim = 32       # P = 4 -> packed (B/4, 128) lane-dense input
    hidden_dim = 64

    w1, b1, w2, b2 = init_params(k_params, state_dim, hidden_dim)
    state = jax.random.normal(k_state, (batch, state_dim), jnp.float32)

    value = jit_fast_critic_forward(state, w1, b1, w2, b2)
    jax.block_until_ready(value)
    assert value.shape == (batch,)

    # f32 reference at HIGHEST precision (so the reference itself isn't the
    # default single-pass bf16 TPU matmul).  Kernel keeps f32 operands, so the
    # real error is tiny; tolerance only allows for MXU pass-count differences.
    hi = jax.lax.Precision.HIGHEST
    h_ref = jnp.maximum(jnp.dot(state, w1, precision=hi) + b1, 0.0)
    ref = (jnp.dot(h_ref, w2, precision=hi) + b2)[:, 0]
    assert jnp.allclose(value, ref, atol=1e-2, rtol=1e-2), (value, ref)

    print("KERNEL_OK")
</pallas_src>

<mosaic_0001>
module attributes {stable_mosaic.version = 11 : i64} {
  func.func @_critic_kernel(%arg0: i32, %arg1: memref<32x128xf32, #tpu.memory_space<vmem>>, %arg2: memref<128x256xf32, #tpu.memory_space<vmem>>, %arg3: memref<1x256xf32, #tpu.memory_space<vmem>>, %arg4: memref<256x4xf32, #tpu.memory_space<vmem>>, %arg5: memref<1xf32, #tpu.memory_space<smem>>, %arg6: memref<32x4xf32, #tpu.memory_space<vmem>>) attributes {dimension_semantics = [#tpu.dimension_semantics<parallel>], iteration_bounds = array<i64: 2>, scalar_prefetch = 0 : i64, scratch_operands = 0 : i64, tpu.core_type = #tpu.core_type<tc>, window_params = [{transform_indices = @transform_0, window_bounds = array<i64: 32, 128>}, {pipeline_mode = #tpu.pipeline_mode<synchronous>, transform_indices = @transform_1, window_bounds = array<i64: 128, 256>}, {pipeline_mode = #tpu.pipeline_mode<synchronous>, transform_indices = @transform_2, window_bounds = array<i64: 1, 256>}, {pipeline_mode = #tpu.pipeline_mode<synchronous>, transform_indices = @transform_3, window_bounds = array<i64: 256, 4>}, {transform_indices = @transform_4, window_bounds = array<i64: 1>}, {transform_indices = @transform_5, window_bounds = array<i64: 32, 4>}]} {
    %c0 = arith.constant 0 : index
    %c0_0 = arith.constant 0 : index
    %0 = vector.load %arg1[%c0, %c0_0] : memref<32x128xf32, #tpu.memory_space<vmem>>, vector<32x128xf32>
    %c0_1 = arith.constant 0 : index
    %c0_2 = arith.constant 0 : index
    %1 = vector.load %arg2[%c0_1, %c0_2] : memref<128x256xf32, #tpu.memory_space<vmem>>, vector<128x256xf32>
    %cst = arith.constant dense<0.000000e+00> : vector<32x256xf32>
    %2 = tpu.matmul %0, %1, %cst {dimension_numbers = #tpu.dot_dimension_numbers<[1], [0], [0], [1], [0, 0, 1, 1], [], []>} : vector<32x128xf32>, vector<128x256xf32>, vector<32x256xf32> -> vector<32x256xf32>
    %c0_3 = arith.constant 0 : index
    %c0_4 = arith.constant 0 : index
    %3 = vector.load %arg3[%c0_3, %c0_4] : memref<1x256xf32, #tpu.memory_space<vmem>>, vector<1x256xf32>
    %4 = vector.broadcast %3 : vector<1x256xf32> to vector<32x256xf32>
    %5 = arith.addf %2, %4 : vector<32x256xf32>
    %cst_5 = arith.constant 0.000000e+00 : f32
    %6 = vector.broadcast %cst_5 : f32 to vector<32x256xf32>
    %7 = arith.maximumf %5, %6 : vector<32x256xf32>
    %c0_6 = arith.constant 0 : index
    %c0_7 = arith.constant 0 : index
    %8 = vector.load %arg4[%c0_6, %c0_7] : memref<256x4xf32, #tpu.memory_space<vmem>>, vector<256x4xf32>
    %cst_8 = arith.constant dense<0.000000e+00> : vector<32x4xf32>
    %9 = tpu.matmul %7, %8, %cst_8 {dimension_numbers = #tpu.dot_dimension_numbers<[1], [0], [0], [1], [0, 0, 1, 1], [], []>} : vector<32x256xf32>, vector<256x4xf32>, vector<32x4xf32> -> vector<32x4xf32>
    %c0_9 = arith.constant 0 : index
    %10 = memref.load %arg5[%c0_9] : memref<1xf32, #tpu.memory_space<smem>>
    %11 = vector.broadcast %10 : f32 to vector<32x4xf32>
    %12 = arith.addf %9, %11 : vector<32x4xf32>
    %c0_10 = arith.constant 0 : index
    %c0_11 = arith.constant 0 : index
    %13 = vector.load %arg6[%c0_10, %c0_11] : memref<32x4xf32, #tpu.memory_space<vmem>>, vector<32x4xf32>
    tpu.vector_store %arg6[%c0_10, %c0_11], %12 {strides = array<i32>} : memref<32x4xf32, #tpu.memory_space<vmem>>, vector<32x4xf32>,
    return
  }
  func.func @transform_0(%arg0: i32) -> (i32, i32) {
    %c0_i32 = arith.constant 0 : i32
    %c0_i32_0 = arith.constant 0 : i32
    return %arg0, %c0_i32 : i32, i32
  }
  func.func @transform_1(%arg0: i32) -> (i32, i32) {
    %c0_i32 = arith.constant 0 : i32
    %c0_i32_0 = arith.constant 0 : i32
    %c0_i32_1 = arith.constant 0 : i32
    return %c0_i32, %c0_i32_0 : i32, i32
  }
  func.func @transform_2(%arg0: i32) -> (i32, i32) {
    %c0_i32 = arith.constant 0 : i32
    %c0_i32_0 = arith.constant 0 : i32
    %c0_i32_1 = arith.constant 0 : i32
    return %c0_i32, %c0_i32_0 : i32, i32
  }
  func.func @transform_3(%arg0: i32) -> (i32, i32) {
    %c0_i32 = arith.constant 0 : i32
    %c0_i32_0 = arith.constant 0 : i32
    %c0_i32_1 = arith.constant 0 : i32
    return %c0_i32, %c0_i32_0 : i32, i32
  }
  func.func @transform_4(%arg0: i32) -> i32 {
    %c0_i32 = arith.constant 0 : i32
    %c0_i32_0 = arith.constant 0 : i32
    return %c0_i32 : i32
  }
  func.func @transform_5(%arg0: i32) -> (i32, i32) {
    %c0_i32 = arith.constant 0 : i32
    %c0_i32_0 = arith.constant 0 : i32
    return %arg0, %c0_i32 : i32, i32
  }
}

</mosaic_0001>

<bundles_post_ra>
// kernel: tpu_custom_call.1
= control target key start
LH: loop header
LB: loop body
LE: loop exit
PB: predicated region body
PF: predicated region fallthrough
CT: control target
= control target key end

     0   :  { %s1167_s0 = inlined_call_operand.hbm [shape: f32[64,128], index: 0, kind: input, shape index: {}]   ;;  %s1168_s1 = inlined_call_operand.vmem [shape: f32[128,256], index: 1, kind: input, shape index: {}]   ;;  %s1169_s2 = inlined_call_operand.vmem [shape: f32[1,256], index: 2, kind: input, shape index: {}]   ;;  %s1170_s3 = inlined_call_operand.vmem [shape: f32[256,4], index: 3, kind: input, shape index: {}]   ;;  %s1171_s4 = inlined_call_operand.<no memory space> [shape: f32[1], index: 4, kind: input, shape index: {}]   ;;  %s1172_s5 = inlined_call_operand.vmem [shape: f32[64,4], index: 5, kind: output, shape index: {}]  }
   0x1   :  { %10 = sst [smem:[#allocation2]] %s1171_s4 }
   0x2   :  { %11 = vsyncpa [#allocation4], 0 }
   0x3   :  { %13 = vsyncpa [#allocation4 + $0x1], 0  ;;  %s851_s20 = smov 0   ;;  %s853_s21 = smov 0  }
   0x4   :  { %s855_s22 = smov 0   ;;  %s857_s23 = smov 0  }
   0x5 LB: > { %s584_s4 = sadd.s32 4294967295, %s812_s23   ;;  %s871_s24 = sadd.s32 1, %s812_s23   ;;  %s812_s23 = sphi %s857_s23, %s1179_s23   ;;  %s808_s22 = sphi %s855_s22, %s1178_s22   ;;  %s804_s21 = sphi %s853_s21, %s1177_s21   ;;  %s800_s20 = sphi %s851_s20, %s1176_s20  }
   0x6   : > { %s23_s25 = ssub.s32 %s812_s23, %s871_s24  ;;  %s26_s26 = sadd.s32 1, %s808_s22 }
   0x7   : > { %p24_p0 = scmp.eq.s32.totalorder %s23_s25, 0  ;;  %p33_p1 = scmp.ne.s32.totalorder %s808_s22, %s804_s21 }
   0x8   : > { %p34_p2 = scmp.eq.s32.totalorder %s812_s23, 0  ;;  %p39_p3 = scmp.ne.s32.totalorder %s804_s21, %s800_s20 }
   0x9   : > { %s881_s27 = scalar_select %p24_p0, %s808_s22, %s26_s26  }
   0xa   : > { %p35_p4 = por %p34_p2, %p33_p1  ;;  %p40_p5 = scmp.eq.s32.totalorder %s584_s4, 0 }
   0xb   : > { %p712_p6 = scmp.lt.s32.totalorder %s812_s23, 2  ;;  %s185_s29 = sand.u32 1, %s808_s22  }
   0xc   : > { %p886_p7 = por %p40_p5, %p39_p3  ;;  %s588_s30 = sshll.u32 %s185_s29, 5 }
   0xd   : > { %s597_s6 = sshll.u32 %s812_s23, 9  ;;  %s189_s10 = scalar_lea.vmem [#allocation3], %s588_s30 }
   0xe   : > { %s895_s9 = scalar_lea.hbm %s1167_s0, %s597_s6  ;;  %s196_s11 = sshll.u32 %s189_s10, 4  ;;  %s897_s11 = int_to_ptr.vmem [resolvable:$true] %s196_s11 }
   0xf   : > { %p899_p8 = pnand %p712_p6, %p35_p4  ;;  %s904_s13 = scalar_lea.sflag [#allocation4], %s185_s29 }
  0x10   : > { %s748_s14 = scalar_lea.hbm %s895_s9, 512  ;;  %s753_s17 = scalar_lea.hbm %s1167_s0, 1024 }
  0x11   : > { %p749_p10 = scmp.ne.s32.totalorder %s895_s9, %s748_s14  ;;  %p750_p11 = pneg %p899_p8 }
  0x12   : > { %p754_p0 = scmp.lt.u32.totalorder %s895_s9, %s1167_s0  ;;  %p755_p1 = scmp.lt.u32.totalorder %s753_s17, %s748_s14 }
  0x13   : > { %p751_p12 = pnand %p750_p11, %p749_p10  ;;  %p757_p3 = scmp.lt.u32.totalorder %s748_s14, %s895_s9 }
  0x14   : > { %p756_p2 = por %p755_p1, %p754_p0 }
  0x15   : > { %p752_p13 = pneg %p751_p12 }
  0x16   : > { %p758_p4 = por %p757_p3, %p756_p2 }
  0x18   : > { %p759_p5 = pnand %p758_p4, %p752_p13 }
  0x1a   : > { %762 = shalt.err (!%p759_p5)
}
  0x1b   : > { %s763_s20 = scalar_lea.vmem %s897_s11, 512  ;;  %s814_s25 = smov [#allocation3]  }
  0x1c   : > { %p764_p6 = scmp.ne.s32.totalorder %s897_s11, %s763_s20  ;;  %s768_s26 = sshll.u32 %s814_s25, 4  ;;  %s769_s26 = int_to_ptr.vmem [resolvable:$false] %s768_s26 }
  0x1d   : > { %s770_s29 = scalar_lea.vmem %s769_s26, 1024  ;;  %p771_p9 = scmp.lt.s32.totalorder %s897_s11, %s769_s26 }
  0x1e   : > { %p766_p10 = pnand %p764_p6, %p750_p11  ;;  %p772_p0 = scmp.lt.s32.totalorder %s770_s29, %s763_s20 }
  0x20   : > { %p767_p12 = pneg %p766_p10  ;;  %p773_p1 = por %p772_p0, %p771_p9 }
  0x22   : > { %p774_p2 = pnand %p773_p1, %p767_p12 }
  0x24   : > { %777 = shalt.err (!%p774_p2)
}
  0x25   : > { %s815_s30 = smov 128   ;;  %s816_s6 = smov 8  }
  0x26   : > { %711 = dma.hbm_to_vmem [thread:$0]  (!%p899_p8), %s895_s9, 512, %s897_s11, %s904_s13, %s815_s30, %s815_s30, %s816_s6  }
  0x27   : > { %p204_p11 = scmp.lt.s32.totalorder %s812_s23, 3  ;;  %p1175_p13 = scmp.ge.s32.totalorder %s812_s23, 1 }
  0x29   : > { %p205_p3 = pnand %p1175_p13, %p204_p11 }
  0x2a   : > { %s210_s7 = sand.u32 (!%p205_p3), 1, %s804_s21  }
  0x2b   : > { %208 = sbr.rel (%p205_p3) target bundleno = 534 (0x216), region = 40  ;;  %s592_s8 = sshll.u32 (!%p205_p3), %s210_s7, 5 }
  0x2c   : > { %s211_s10 = scalar_lea.sflag (!%p205_p3), [#allocation4], %s210_s7  ;;  %s936_s14 = scalar_lea.vmem (!%p205_p3), [#allocation3], %s592_s8 }
  0x32   : > { %795 = dma.done.wait (%p886_p7), %s211_s10, 512  }
  0x33   : > { %797 = vsyncadd (%p886_p7), %s211_s10, 4294966784  ;;  %v817_v0 = vmov 0.0   ;;  %v253_v1 = vld [vmem:[%s1168_s1 + $0x8] sm:$0xff]  ;;  %v255_v2 = vld [vmem:[%s1168_s1 + $0x18] sm:$0xff]  ;;  %s593_s6 = sshll.u32 %s584_s4, 2  ;;  %s425_s7 = sld [smem:[#allocation2]] }
  0x34   : > { %360 = vmatprep.mubr.f32.mxu0 %v817_v0  ;;  %v252_v3 = vld [vmem:[%s1168_s1] sm:$0xff]  ;;  %v642_v4 = vpack.c.bf16 %v255_v2, %v253_v1  ;;  %v254_v5 = vld [vmem:[%s1168_s1 + $0x10] sm:$0xff]  ;;  %v257_v6 = vld [vmem:[%s1168_s1 + $0x28] sm:$0xff]  ;;  %p243_p7 = scmp.lt.s32.totalorder %s593_s6, 7  ;;  %vm512_vm0 = vcmask 31744  }
  0x35   : > { %v259_v7 = vld [vmem:[%s1168_s1 + $0x38] sm:$0xff]  ;;  %v644_v8 = vpack.c.bf16 %v254_v5, %v252_v3  ;;  %v256_v10 = vld [vmem:[%s1168_s1 + $0x20] sm:$0xff]  ;;  %v258_v11 = vld [vmem:[%s1168_s1 + $0x30] sm:$0xff] }
  0x36   : > { %v646_v9 = vpack.c.bf16 %v259_v7, %v257_v6  ;;  %v261_v12 = vld [vmem:[%s1168_s1 + $0x48] sm:$0xff]  ;;  %643 = vmatprep.subr.bf16.mxu0 %v642_v4  ;;  %v263_v13 = vld [vmem:[%s1168_s1 + $0x58] sm:$0xff]  ;;  %v648_v14 = vpack.c.bf16 %v258_v11, %v256_v10  ;;  %v260_v16 = vld [vmem:[%s1168_s1 + $0x40] sm:$0xff]  ;;  %s1181_s6 = smov (!%p243_p7, %s593_s6), 7 }
  0x37   : > { %645 = vmatpush1.bf16.msra.mxu0 %v644_v8  ;;  %v650_v15 = vpack.c.bf16 %v263_v13, %v261_v12  ;;  %v262_v17 = vld [vmem:[%s1168_s1 + $0x50] sm:$0xff]  ;;  %v265_v18 = vld [vmem:[%s1168_s1 + $0x68] sm:$0xff]  ;;  %v267_v19 = vld [vmem:[%s1168_s1 + $0x78] sm:$0xff]  ;;  %s594_s8 = sshll.u32 %s1181_s6, 3 }
  0x38   : > { %647 = vmatprep.subr.bf16.mxu0 %v646_v9  ;;  %v652_v20 = vpack.c.bf16 %v262_v17, %v260_v16  ;;  %v654_v21 = vpack.c.bf16 %v267_v19, %v265_v18  ;;  %v264_v22 = vld [vmem:[%s1168_s1 + $0x60] sm:$0xff]  ;;  %v266_v23 = vld [vmem:[%s1168_s1 + $0x70] sm:$0xff]  ;;  %v269_v24 = vld [vmem:[%s1168_s1 + $0x88] sm:$0xff]  ;;  %s246_s11 = scalar_lea.vmem %s1172_s5, %s594_s8 }
  0x39   : > { %v271_v25 = vld [vmem:[%s1168_s1 + $0x98] sm:$0xff]  ;;  %v268_v26 = vld [vmem:[%s1168_s1 + $0x80] sm:$0xff]  ;;  %v270_v27 = vld [vmem:[%s1168_s1 + $0x90] sm:$0xff]  ;;  %v656_v28 = vpack.c.bf16 %v266_v23, %v264_v22 }
  0x3a   : > { %v273_v29 = vld [vmem:[%s1168_s1 + $0xa8] sm:$0xff]  ;;  %v275_v30 = vld [vmem:[%s1168_s1 + $0xb8] sm:$0xff]  ;;  %v409_v31 = vld [vmem:[%s1170_s3 + $0x80] sm:$0xff]  ;;  %v658_v34 = vpack.c.bf16 %v271_v25, %v269_v24  ;;  %v660_v45 = vpack.c.bf16 %v270_v27, %v268_v26 }
  0x3b   : > { %649 = vmatpush1.bf16.msra.mxu0 %v648_v14  ;;  %v410_v32 = vld [vmem:[%s1170_s3 + $0x88] sm:$0xff]  ;;  %v393_v33 = vld [vmem:[%s1170_s3] sm:$0xff]  ;;  %v411_v37 = vld [vmem:[%s1170_s3 + $0x90] sm:$0xff]  ;;  %v662_v49 = vpack.c.bf16 %v275_v30, %v273_v29 }
  0x3c   : > { %651 = vmatprep.subr.bf16.mxu0 %v650_v15  ;;  %v674_v35 = vpack.c.bf16 %v410_v32, %v409_v31  ;;  %v394_v36 = vld [vmem:[%s1170_s3 + $0x8] sm:$0xff]  ;;  %v412_v38 = vld [vmem:[%s1170_s3 + $0x98] sm:$0xff]  ;;  %v395_v41 = vld [vmem:[%s1170_s3 + $0x10] sm:$0xff] }
  0x3d   : > { %v676_v39 = vpack.c.bf16 %v394_v36, %v393_v33  ;;  %v678_v40 = vpack.c.bf16 %v412_v38, %v411_v37  ;;  %v396_v42 = vld [vmem:[%s1170_s3 + $0x18] sm:$0xff]  ;;  %v413_v43 = vld [vmem:[%s1170_s3 + $0xa0] sm:$0xff]  ;;  %v414_v44 = vld [vmem:[%s1170_s3 + $0xa8] sm:$0xff]  ;;  %v286_v37 = vlaneseq }
  0x3e   : > { %675 = vmatprep.subr.bf16.mxu1 %v674_v35  ;;  %v272_v46 = vld [vmem:[%s1168_s1 + $0xa0] sm:$0xff]  ;;  %v274_v47 = vld [vmem:[%s1168_s1 + $0xb0] sm:$0xff]  ;;  %v680_v48 = vpack.c.bf16 %v396_v42, %v395_v41  ;;  %v277_v50 = vld [vmem:[%s1168_s1 + $0xc8] sm:$0xff]  ;;  %v682_v51 = vpack.c.bf16 %v414_v44, %v413_v43 }
  0x3f   : > { %653 = vmatpush1.bf16.msra.mxu0 %v652_v20  ;;  %677 = vmatpush3.bf16.msra.mxu1 %v676_v39  ;;  %v397_v52 = vld [vmem:[%s1170_s3 + $0x20] sm:$0xff]  ;;  %v398_v53 = vld [vmem:[%s1170_s3 + $0x28] sm:$0xff]  ;;  %v279_v54 = vld [vmem:[%s1168_s1 + $0xd8] sm:$0xff]  ;;  %v664_v57 = vpack.c.bf16 %v274_v47, %v272_v46  ;;  %v287_v38 = vshrl.u32 %v286_v37, 7 }
  0x40   : > { %655 = vmatprep.subr.bf16.mxu0 %v654_v21  ;;  %679 = vmatprep.subr.bf16.mxu1 %v678_v40  ;;  %v415_v55 = vld [vmem:[%s1170_s3 + $0xb0] sm:$0xff]  ;;  %v416_v56 = vld [vmem:[%s1170_s3 + $0xb8] sm:$0xff]  ;;  %v276_v58 = vld [vmem:[%s1168_s1 + $0xc0] sm:$0xff]  ;;  %v684_v60 = vpack.c.bf16 %v398_v53, %v397_v52  ;;  %v666_v61 = vpack.c.bf16 %v279_v54, %v277_v50 }
  0x41   : > { %v278_v59 = vld [vmem:[%s1168_s1 + $0xd0] sm:$0xff]  ;;  %v281_v62 = vld [vmem:[%s1168_s1 + $0xe8] sm:$0xff]  ;;  %v686_v63 = vpack.c.bf16 %v416_v56, %v415_v55  ;;  %v400_v2 = vld [vmem:[%s1170_s3 + $0x38] sm:$0xff]  ;;  %v288_v39 = vsub.s32 0, %v287_v38  ;;  %v292_v41 = vsub.s32 1, %v287_v38 }
  0x42   : > { %v399_v1 = vld [vmem:[%s1170_s3 + $0x30] sm:$0xff]  ;;  %v283_v3 = vld [vmem:[%s1168_s1 + $0xf8] sm:$0xff]  ;;  %v417_v4 = vld [vmem:[%s1170_s3 + $0xc0] sm:$0xff]  ;;  %v668_v6 = vpack.c.bf16 %v278_v59, %v276_v58 }
  0x43   : > { %657 = vmatpush1.bf16.msra.mxu0 %v656_v28  ;;  %681 = vmatpush3.bf16.msra.mxu1 %v680_v48  ;;  %v418_v5 = vld [vmem:[%s1170_s3 + $0xc8] sm:$0xff]  ;;  %v280_v7 = vld [vmem:[%s1168_s1 + $0xe0] sm:$0xff]  ;;  %v688_v8 = vpack.c.bf16 %v400_v2, %v399_v1  ;;  %v670_v9 = vpack.c.bf16 %v283_v3, %v281_v62  ;;  %v282_v10 = vld [vmem:[%s1168_s1 + $0xf0] sm:$0xff] }
  0x44   : > { %659 = vmatprep.subr.bf16.mxu0 %v658_v34  ;;  %683 = vmatprep.subr.bf16.mxu1 %v682_v51  ;;  %v690_v11 = vpack.c.bf16 %v418_v5, %v417_v4  ;;  %v401_v12 = vld [vmem:[%s1170_s3 + $0x40] sm:$0xff]  ;;  %v402_v13 = vld [vmem:[%s1170_s3 + $0x48] sm:$0xff]  ;;  %v419_v14 = vld [vmem:[%s1170_s3 + $0xd0] sm:$0xff]  ;;  %v672_v16 = vpack.c.bf16 %v282_v10, %v280_v7 }
  0x45   : > { %v420_v15 = vld [vmem:[%s1170_s3 + $0xd8] sm:$0xff]  ;;  %v692_v17 = vpack.c.bf16 %v402_v13, %v401_v12  ;;  %v403_v19 = vld [vmem:[%s1170_s3 + $0x50] sm:$0xff]  ;;  %v421_v21 = vld [vmem:[%s1170_s3 + $0xe0] sm:$0xff] }
  0x46   : > { %v694_v18 = vpack.c.bf16 %v420_v15, %v419_v14  ;;  %v404_v20 = vld [vmem:[%s1170_s3 + $0x58] sm:$0xff]  ;;  %v422_v22 = vld [vmem:[%s1170_s3 + $0xe8] sm:$0xff]  ;;  %v248_v23 = vld [vmem:[%s936_s14] sm:$0xff] }
  0x47   : > { %661 = vmatpush1.bf16.msra.mxu0 %v660_v45  ;;  %685 = vmatpush3.bf16.msra.mxu1 %v684_v60  ;;  %v696_v24 = vpack.c.bf16 %v404_v20, %v403_v19  ;;  %v698_v25 = vpack.c.bf16 %v422_v22, %v421_v21  ;;  %v249_v26 = vld [vmem:[%s936_s14 + $0x8] sm:$0xff]  ;;  %v250_v27 = vld [vmem:[%s936_s14 + $0x10] sm:$0xff]  ;;  %v251_v28 = vld [vmem:[%s936_s14 + $0x18] sm:$0xff] }
  0x48   : > { %663 = vmatprep.subr.bf16.mxu0 %v662_v49  ;;  %687 = vmatprep.subr.bf16.mxu1 %v686_v63  ;;  %v405_v29 = vld [vmem:[%s1170_s3 + $0x60] sm:$0xff]  ;;  %v406_v30 = vld [vmem:[%s1170_s3 + $0x68] sm:$0xff]  ;;  %v423_v32 = vld [vmem:[%s1170_s3 + $0xf0] sm:$0xff] }
  0x49   : > { %v700_v31 = vpack.c.bf16 %v406_v30, %v405_v29  ;;  %v407_v34 = vld [vmem:[%s1170_s3 + $0x70] sm:$0xff]  ;;  %v408_v35 = vld [vmem:[%s1170_s3 + $0x78] sm:$0xff]  ;;  %v284_v40 = vld [vmem:[%s1169_s2] sm:$0x3] }
  0x4a   : > { %v704_v36 = vpack.c.bf16 %v408_v35, %v407_v34  ;;  %v289_v42 = vrot.slane %v284_v40, %v288_v39  ;;  %v293_v43 = vrot.slane %v284_v40, %v292_v41 }
  0x4b   : > { %665 = vmatpush1.bf16.msra.mxu0 %v664_v57  ;;  %689 = vmatpush3.bf16.msra.mxu1 %v688_v8 }
  0x4c   : > { %667 = vmatprep.subr.bf16.mxu0 %v666_v61  ;;  %691 = vmatprep.subr.bf16.mxu1 %v690_v11 }
  0x4f   : > { %669 = vmatpush1.bf16.msra.mxu0 %v668_v6  ;;  %693 = vmatpush3.bf16.msra.mxu1 %v692_v17  ;;  %v426_v6 = vstv %s425_s7 }
  0x50   : > { %671 = vmatprep.subr.bf16.mxu0 %v670_v9  ;;  %695 = vmatprep.subr.bf16.mxu1 %v694_v18 }
  0x53   : > { %673 = vmatpush1.bf16.msra.mxu0 %v672_v16  ;;  %697 = vmatpush3.bf16.msra.mxu1 %v696_v24 }
  0x54   : > { %699 = vmatprep.subr.bf16.mxu1 %v698_v25 }
  0x56   : > { %361 = vmatmul.mubr.f32.vlgmr.msra.gmra.mrb[0].mxu0 %v248_v23 }
  0x57   : > { %366 = vmatprep.mubr.f32.mxu0 %v817_v0  ;;  %701 = vmatpush3.bf16.msra.mxu1 %v700_v31 }
  0x5a   : > { %367 = vmatmul.mubr.f32.gmra.mrb[2].mxu0 %v249_v26 }
  0x5b   : > { %372 = vmatprep.mubr.f32.mxu0 %v817_v0 }
  0x5e   : > { %373 = vmatmul.mubr.f32.gmra.mrb[4].mxu0 %v250_v27 }
  0x5f   : > { %378 = vmatprep.mubr.f32.mxu0 %v817_v0  ;;  %v424_v0 = vld [vmem:[%s1170_s3 + $0xf8] sm:$0xff] }
  0x60   : > { %v702_v33 = vpack.c.bf16 %v424_v0, %v423_v32 }
  0x62   : > { %379 = vmatmul.mubr.f32.gmra.mrb[6].mxu0 %v251_v28  ;;  %703 = vmatprep.subr.bf16.mxu1 %v702_v33 }
  0x63   : > { %705 = vmatpush3.bf16.msra.mxu1 %v704_v36 }
 0x129   : > { %v362_v44 = vpop.f32.mrb[0].mxu0 }
 0x12a   : > { %v363_v45 = vadd.f32 %v362_v44, %v289_v42  ;;  %v364_v46 = vpop.f32.mrb[1].mxu0 }
 0x12b   : > { %v365_v47 = vadd.f32 %v364_v46, %v293_v43 }
 0x12c   : > { %v385_v50 = vmax.f32 %v363_v45, 0.0 }
 0x12d   : > { %v368_v48 = vpop.f32.mrb[2].mxu0  ;;  %v386_v49 = vmax.f32 %v365_v47, 0.0 }
 0x12e   : > { %v369_v51 = vadd.f32 %v368_v48, %v289_v42  ;;  %v370_v52 = vpop.f32.mrb[3].mxu0 }
 0x12f   : > { %v371_v53 = vadd.f32 %v370_v52, %v293_v43  ;;  %491 = vmatprep.mubr.f32.mxu1 %v386_v49 }
 0x130   : > { %492 = vmatmul.mubr.f32.vlgmr.msra.gmra.mrb[0].mxu1 %v385_v50  ;;  %v387_v56 = vmax.f32 %v369_v51, 0.0 }
 0x131   : > { %v388_v54 = vmax.f32 %v371_v53, 0.0  ;;  %v374_v55 = vpop.f32.mrb[4].mxu0 }
 0x132   : > { %v375_v57 = vadd.f32 %v374_v55, %v289_v42  ;;  %v376_v58 = vpop.f32.mrb[5].mxu0 }
 0x133   : > { %v377_v59 = vadd.f32 %v376_v58, %v293_v43  ;;  %496 = vmatprep.mubr.f32.mxu1 %v388_v54 }
 0x134   : > { %497 = vmatmul.mubr.f32.gmra.mrb[2].mxu1 %v387_v56  ;;  %v389_v62 = vmax.f32 %v375_v57, 0.0 }
 0x135   : > { %v390_v60 = vmax.f32 %v377_v59, 0.0  ;;  %v380_v61 = vpop.f32.mrb[6].mxu0 }
 0x136   : > { %v381_v63 = vadd.f32 %v380_v61, %v289_v42  ;;  %v382_v1 = vpop.f32.mrb[7].mxu0 }
 0x137   : > { %v383_v2 = vadd.f32 %v382_v1, %v293_v43  ;;  %501 = vmatprep.mubr.f32.mxu1 %v390_v60 }
 0x138   : > { %502 = vmatmul.mubr.f32.gmra.mrb[4].mxu1 %v389_v62  ;;  %v391_v4 = vmax.f32 %v381_v63, 0.0 }
 0x139   : > { %v392_v3 = vmax.f32 %v383_v2, 0.0 }
 0x13b   : > { %506 = vmatprep.mubr.f32.mxu1 %v392_v3 }
 0x13c   : > { %507 = vmatmul.mubr.f32.gmra.mrb[6].mxu1 %v391_v4 }
 0x203   : > { %v630_v5 = vpop.f32.mrb[0].mxu1 }
 0x204   : > { %v631_v7 = vpop.f32.mrb[1].mxu1 }
 0x205   : > { %v632_v8 = vadd.f32 %v631_v7, %v630_v5 }
 0x207   : > { %v494_v9 = vadd.f32 %v632_v8, %v426_v6  ;;  %v633_v10 = vpop.f32.mrb[2].mxu1 }
 0x208   : > { %v634_v11 = vpop.f32.mrb[3].mxu1 }
 0x209   : > { %513 = vst.msk [vmem:[%s246_s11] sm:$0xff] %vm512_vm0, %v494_v9  ;;  %v635_v12 = vadd.f32 %v634_v11, %v633_v10 }
 0x20b   : > { %v499_v13 = vadd.f32 %v635_v12, %v426_v6  ;;  %v636_v14 = vpop.f32.mrb[4].mxu1 }
 0x20c   : > { %v637_v15 = vpop.f32.mrb[5].mxu1 }
 0x20d   : > { %514 = vst.msk [vmem:[%s246_s11 + $0x8] sm:$0xff] %vm512_vm0, %v499_v13  ;;  %v638_v16 = vadd.f32 %v637_v15, %v636_v14 }
 0x20f   : > { %v504_v17 = vadd.f32 %v638_v16, %v426_v6  ;;  %v639_v18 = vpop.f32.mrb[6].mxu1 }
 0x210   : > { %v640_v19 = vpop.f32.mrb[7].mxu1 }
 0x211   : > { %515 = vst.msk [vmem:[%s246_s11 + $0x10] sm:$0xff] %vm512_vm0, %v504_v17  ;;  %v641_v20 = vadd.f32 %v640_v19, %v639_v18 }
 0x213   : > { %v509_v21 = vadd.f32 %v641_v20, %v426_v6 }
 0x215   : > { %516 = vst.msk [vmem:[%s246_s11 + $0x18] sm:$0xff] %vm512_vm0, %v509_v21 }
 0x216 PF: > { %p16_p8 = scmp.ge.s32.totalorder %s871_s24, 4   ;;  %s1176_s20 = smov %s804_s21 }
 0x217   : > { %s1177_s21 = smov %s808_s22  ;;  %s1178_s22 = smov %s881_s27 }
 0x218   : > { %s1179_s23 = smov %s871_s24  ;;  %18 = sbr.rel (!%p16_p8) target bundleno = 5 (0x5), region = 80 }
 0x21f   :  { %539 = vsyncpa [#allocation4], 1 }
 0x220   :  { %541 = vsyncpa [#allocation4 + $0x1], 1 }

</bundles_post_ra>
